<compile_context>
chip_gen: v7x
topology: tpu7x:2x2x1
jax: 0.10.0
libtpu: 0.0.40
codegen_flags: <defaults>
</compile_context>

<pallas_src>
import math
import numpy as np
import jax
import jax.numpy as jnp
from jax.experimental import pallas as pl
from jax.experimental.pallas import tpu as pltpu


def _correlated_gcn_kernel(feat_ref, graph_ref, wcat_ref, bias_ref,
                           dp1b_ref, dp2b_ref, out_ref, alpha_ref=None):
    """One grid step processes a block of Bb batch elements.

    feat_ref : [Bb, N, Din]   f32
    graph_ref: [Bb, N, N]     int32 edge labels (0 == no edge)
    wcat_ref : [Din, 4*Dout]  f32  == concat([W2^T, (W0+W1)^T, L1^T, L2^T], axis=1)
    bias_ref : [L, Dout]      f32  label-bias table
    dp1b_ref : [1, Dout], dp2b_ref: [1, Dout]
    out_ref  : [Bb, N, Dout]
    alpha_ref: [Bb, N, N]     (only present when get_alpha=True)
    """
    f = feat_ref[...]
    g = graph_ref[...]
    bias_tbl = bias_ref[...]
    L = bias_tbl.shape[0]
    Dout = bias_tbl.shape[1]

    adj = (g != 0).astype(jnp.float32)                              # [Bb, N, N]

    # One wide, lane-dense projection matmul covering all four Dout-wide heads:
    #   [Bb, N, Din] @ [Din, 4*Dout] -> [Bb, N, 4*Dout]
    proj = jnp.einsum("bnd,dk->bnk", f, wcat_ref[...],
                      preferred_element_type=jnp.float32)
    h_self = proj[..., 0 * Dout:1 * Dout]                           # f @ W2^T
    h_sum = proj[..., 1 * Dout:2 * Dout]                            # f @ (W0+W1)^T
    p1 = proj[..., 2 * Dout:3 * Dout] + dp1b_ref[...]               # DotProduct proj 1
    p2 = proj[..., 3 * Dout:4 * Dout] + dp2b_ref[...]               # DotProduct proj 2

    # Label-bias term: sum_j bias[graph[:, i, j], :] via per-label counts.
    # No [N, N, L] one-hot is materialized; L is a small, statically unrolled loop
    # of lane-dense compares over the [Bb, N, N] tile.
    bias_term = jnp.zeros(h_self.shape, jnp.float32)                # [Bb, N, Dout]
    for lab in range(L):
        cnt = jnp.sum((g == lab).astype(jnp.float32), axis=-1)      # [Bb, N]
        bias_term = bias_term + cnt[..., None] * bias_tbl[lab]

    # Directed graph conv (W0 and W1 were algebraically folded in the wrapper).
    conv = (h_self
            + jnp.einsum("bij,bjd->bid", adj, h_sum,
                         preferred_element_type=jnp.float32)
            + bias_term)                                            # [Bb, N, Dout]

    # Correlation attention: relu(p1 @ p2^T) -> adj @ . -> softmax over dim 1.
    scores = jnp.einsum("bik,bjk->bij", p1, p2,
                        preferred_element_type=jnp.float32)         # [Bb, N, N]
    scores = jnp.maximum(scores, 0.0)
    alpha = jnp.einsum("bij,bjk->bik", adj, scores,
                       preferred_element_type=jnp.float32)
    # nn.Softmax(dim=1) on [B, N, N] -> normalize over the first object axis.
    m = jnp.max(alpha, axis=1, keepdims=True)
    e = jnp.exp(alpha - m)
    denom = jnp.sum(e, axis=1, keepdims=True)
    alpha = e * pl.reciprocal(denom, approx=True)                   # EUP vrcp slot

    out_ref[...] = jnp.einsum("bij,bjd->bid", alpha, conv,
                              preferred_element_type=jnp.float32)   # [Bb, N, Dout]
    if alpha_ref is not None:
        alpha_ref[...] = alpha


def correlated_graph_conv(feature, graph, params, get_alpha=False, block_batch=None):
    B, N, Din = feature.shape
    Dout = params["w0"].shape[0]
    L = params["bias"].shape[0]

    # Process several batch elements per grid step to amortize the ~0.35 us
    # per-step pipeline overhead (important at small N / Din).
    if block_batch is None:
        block_batch = min(B, 8)
    block_batch = max(1, min(block_batch, B))
    while B % block_batch != 0:
        block_batch -= 1
    Bb = block_batch
    grid = (B // Bb,)

    # Fold W0 + W1 (adj @ (fW0^T + fW1^T) == adj @ f(W0+W1)^T) and concatenate all
    # projection weights, pre-transposed, into one wide [Din, 4*Dout] slab so the
    # kernel issues a single lane-dense MXU matmul for every projection.
    wcat = jnp.concatenate(
        [params["w2"].T, (params["w0"] + params["w1"]).T,
         params["dp1_w"].T, params["dp2_w"].T], axis=1).astype(jnp.float32)

    in_specs = [
        pl.BlockSpec((Bb, N, Din), lambda b: (b, 0, 0)),      # feature block
        pl.BlockSpec((Bb, N, N), lambda b: (b, 0, 0)),        # graph block (labels)
        pl.BlockSpec((Din, 4 * Dout), lambda b: (0, 0)),      # fused weights
        pl.BlockSpec((L, Dout), lambda b: (0, 0)),            # label-bias table
        pl.BlockSpec((1, Dout), lambda b: (0, 0)),            # DotProduct bias 1
        pl.BlockSpec((1, Dout), lambda b: (0, 0)),            # DotProduct bias 2
    ]

    if get_alpha:
        out_shape = (jax.ShapeDtypeStruct((B, N, Dout), jnp.float32),
                     jax.ShapeDtypeStruct((B, N, N), jnp.float32))
        out_specs = (pl.BlockSpec((Bb, N, Dout), lambda b: (b, 0, 0)),
                     pl.BlockSpec((Bb, N, N), lambda b: (b, 0, 0)))
    else:
        # Skip the [B, N, N] alpha HBM writeback entirely when not requested.
        out_shape = jax.ShapeDtypeStruct((B, N, Dout), jnp.float32)
        out_specs = pl.BlockSpec((Bb, N, Dout), lambda b: (b, 0, 0))

    # Rough per-step VMEM footprint (double-buffered blocks + intermediates).
    # Only raise the scoped limit when the default (16 MiB on v5e) is too small.
    block_bytes = 4 * (2 * (Bb * N * Din + Bb * N * N + Bb * N * Dout
                            + (Bb * N * N if get_alpha else 0))
                       + 6 * Bb * N * N + 6 * Bb * N * Dout
                       + Din * 4 * Dout + L * Dout)
    vmem_limit = None
    if block_bytes > 12 * 1024 * 1024:
        vmem_limit = min(int(block_bytes * 3 // 2), 48 * 1024 * 1024)

    compiler_params = pltpu.CompilerParams(
        dimension_semantics=("parallel",),
        vmem_limit_bytes=vmem_limit)

    result = pl.pallas_call(
        _correlated_gcn_kernel,
        out_shape=out_shape,
        grid=grid,
        in_specs=in_specs,
        out_specs=out_specs,
        compiler_params=compiler_params,
    )(feature, graph, wcat, params["bias"], params["dp1_b"], params["dp2_b"])

    return result  # out or (out, alpha)


def _reference(feature, graph, p):
    """Pure-JAX reference mirroring the PyTorch module."""
    adj = (graph != 0).astype(jnp.float32)
    h = (feature @ p["w2"].T
         + jnp.einsum("bij,bjd->bid", adj, feature @ p["w0"].T)
         + jnp.einsum("bij,bjd->bid", adj, feature @ p["w1"].T))
    bias_term = jnp.take(p["bias"], graph, axis=0).sum(axis=2)   # [B, N, Dout]
    conv = h + bias_term
    p1 = feature @ p["dp1_w"].T + p["dp1_b"]
    p2 = feature @ p["dp2_w"].T + p["dp2_b"]
    alpha = jnp.einsum("bik,bjk->bij", p1, p2)
    alpha = jnp.maximum(alpha, 0.0)
    alpha = jnp.einsum("bij,bjk->bik", adj, alpha)
    alpha = jax.nn.softmax(alpha, axis=1)
    return jnp.einsum("bij,bjd->bid", alpha, conv), alpha


if __name__ == "__main__":
    B, N, in_dim, out_dim, num_labels = 2, 8, 16, 16, 16

    key = jax.random.PRNGKey(0)
    ks = jax.random.split(key, 12)

    stdv_lin = 1.0 / math.sqrt(in_dim)
    stdv_bias = 1.0 / math.sqrt(out_dim)
    params = {
        "w0": jax.random.uniform(ks[0], (out_dim, in_dim), jnp.float32, -stdv_lin, stdv_lin),
        "w1": jax.random.uniform(ks[1], (out_dim, in_dim), jnp.float32, -stdv_lin, stdv_lin),
        "w2": jax.random.uniform(ks[2], (out_dim, in_dim), jnp.float32, -stdv_lin, stdv_lin),
        "bias": jax.random.uniform(ks[3], (num_labels, out_dim), jnp.float32, -stdv_bias, stdv_bias),
        "dp1_w": jax.random.uniform(ks[4], (out_dim, in_dim), jnp.float32, -stdv_lin, stdv_lin),
        "dp1_b": jax.random.uniform(ks[5], (1, out_dim), jnp.float32, -stdv_lin, stdv_lin),
        "dp2_w": jax.random.uniform(ks[6], (out_dim, in_dim), jnp.float32, -stdv_lin, stdv_lin),
        "dp2_b": jax.random.uniform(ks[7], (1, out_dim), jnp.float32, -stdv_lin, stdv_lin),
    }

    feature = jax.random.normal(ks[8], (B, N, in_dim), jnp.float32)
    graph = jax.random.randint(ks[9], (B, N, N), 0, num_labels, jnp.int32)

    ref_out, ref_alpha = _reference(feature, graph, params)

    # Variant with alpha writeback.
    out, alpha = correlated_graph_conv(feature, graph, params, get_alpha=True)
    out = jax.block_until_ready(out)
    alpha = jax.block_until_ready(alpha)
    np.testing.assert_allclose(np.asarray(out), np.asarray(ref_out), rtol=1e-3, atol=1e-3)
    np.testing.assert_allclose(np.asarray(alpha), np.asarray(ref_alpha), rtol=1e-3, atol=1e-3)

    # Variant without the [B, N, N] alpha writeback (fast path).
    out_only = correlated_graph_conv(feature, graph, params, get_alpha=False)
    out_only = jax.block_until_ready(out_only)
    np.testing.assert_allclose(np.asarray(out_only), np.asarray(ref_out), rtol=1e-3, atol=1e-3)

    print("KERNEL_OK")
</pallas_src>

<mosaic_0001>
module attributes {stable_mosaic.version = 11 : i64} {
  func.func @_correlated_gcn_kernel(%arg0: i32, %arg1: memref<2x8x16xf32, #tpu.memory_space<vmem>>, %arg2: memref<2x8x8xi32, #tpu.memory_space<vmem>>, %arg3: memref<16x64xf32, #tpu.memory_space<vmem>>, %arg4: memref<16x16xf32, #tpu.memory_space<vmem>>, %arg5: memref<1x16xf32, #tpu.memory_space<vmem>>, %arg6: memref<1x16xf32, #tpu.memory_space<vmem>>, %arg7: memref<2x8x16xf32, #tpu.memory_space<vmem>>, %arg8: memref<2x8x8xf32, #tpu.memory_space<vmem>>) attributes {dimension_semantics = [#tpu.dimension_semantics<parallel>], iteration_bounds = array<i64: 1>, scalar_prefetch = 0 : i64, scratch_operands = 0 : i64, tpu.core_type = #tpu.core_type<tc>, window_params = [{transform_indices = @transform_0, window_bounds = array<i64: 2, 8, 16>}, {transform_indices = @transform_1, window_bounds = array<i64: 2, 8, 8>}, {pipeline_mode = #tpu.pipeline_mode<synchronous>, transform_indices = @transform_2, window_bounds = array<i64: 16, 64>}, {pipeline_mode = #tpu.pipeline_mode<synchronous>, transform_indices = @transform_3, window_bounds = array<i64: 16, 16>}, {pipeline_mode = #tpu.pipeline_mode<synchronous>, transform_indices = @transform_4, window_bounds = array<i64: 1, 16>}, {pipeline_mode = #tpu.pipeline_mode<synchronous>, transform_indices = @transform_5, window_bounds = array<i64: 1, 16>}, {transform_indices = @transform_6, window_bounds = array<i64: 2, 8, 16>}, {transform_indices = @transform_7, window_bounds = array<i64: 2, 8, 8>}]} {
    %c0 = arith.constant 0 : index
    %c0_0 = arith.constant 0 : index
    %c0_1 = arith.constant 0 : index
    %0 = vector.load %arg1[%c0, %c0_0, %c0_1] : memref<2x8x16xf32, #tpu.memory_space<vmem>>, vector<2x8x16xf32>
    %c0_2 = arith.constant 0 : index
    %c0_3 = arith.constant 0 : index
    %c0_4 = arith.constant 0 : index
    %1 = vector.load %arg2[%c0_2, %c0_3, %c0_4] : memref<2x8x8xi32, #tpu.memory_space<vmem>>, vector<2x8x8xi32>
    %c0_5 = arith.constant 0 : index
    %c0_6 = arith.constant 0 : index
    %2 = vector.load %arg4[%c0_5, %c0_6] : memref<16x16xf32, #tpu.memory_space<vmem>>, vector<16x16xf32>
    %c0_i32 = arith.constant 0 : i32
    %3 = vector.broadcast %c0_i32 : i32 to vector<2x8x8xi32>
    %4 = arith.cmpi ne, %1, %3 : vector<2x8x8xi32>
    %5 = arith.extui %4 : vector<2x8x8xi1> to vector<2x8x8xi32>
    %6 = arith.sitofp %5 : vector<2x8x8xi32> to vector<2x8x8xf32>
    %c0_7 = arith.constant 0 : index
    %c0_8 = arith.constant 0 : index
    %7 = vector.load %arg3[%c0_7, %c0_8] : memref<16x64xf32, #tpu.memory_space<vmem>>, vector<16x64xf32>
    "tpu.trace_start"() <{level = 10 : i32, message = "bnd,dk->bnk"}> : () -> ()
    %cst = arith.constant dense<0.000000e+00> : vector<2x8x64xf32>
    %8 = tpu.matmul %0, %7, %cst {dimension_numbers = #tpu.dot_dimension_numbers<[2], [0], [0, 1], [1], [0, 0, 0, 1, 1, 1], [], []>} : vector<2x8x16xf32>, vector<16x64xf32>, vector<2x8x64xf32> -> vector<2x8x64xf32>
    "tpu.trace_stop"() : () -> ()
    %9 = vector.extract_strided_slice %8 {offsets = [0, 0, 0], sizes = [2, 8, 16], strides = [1, 1, 1]} : vector<2x8x64xf32> to vector<2x8x16xf32>
    %10 = vector.extract_strided_slice %8 {offsets = [0, 0, 16], sizes = [2, 8, 16], strides = [1, 1, 1]} : vector<2x8x64xf32> to vector<2x8x16xf32>
    %11 = vector.extract_strided_slice %8 {offsets = [0, 0, 32], sizes = [2, 8, 16], strides = [1, 1, 1]} : vector<2x8x64xf32> to vector<2x8x16xf32>
    %c0_9 = arith.constant 0 : index
    %c0_10 = arith.constant 0 : index
    %12 = vector.load %arg5[%c0_9, %c0_10] : memref<1x16xf32, #tpu.memory_space<vmem>>, vector<1x16xf32>
    %13 = vector.shape_cast %12 : vector<1x16xf32> to vector<1x1x16xf32>
    %14 = vector.broadcast %13 : vector<1x1x16xf32> to vector<2x8x16xf32>
    %15 = arith.addf %11, %14 : vector<2x8x16xf32>
    %16 = vector.extract_strided_slice %8 {offsets = [0, 0, 48], sizes = [2, 8, 16], strides = [1, 1, 1]} : vector<2x8x64xf32> to vector<2x8x16xf32>
    %c0_11 = arith.constant 0 : index
    %c0_12 = arith.constant 0 : index
    %17 = vector.load %arg6[%c0_11, %c0_12] : memref<1x16xf32, #tpu.memory_space<vmem>>, vector<1x16xf32>
    %18 = vector.shape_cast %17 : vector<1x16xf32> to vector<1x1x16xf32>
    %19 = vector.broadcast %18 : vector<1x1x16xf32> to vector<2x8x16xf32>
    %20 = arith.addf %16, %19 : vector<2x8x16xf32>
    %cst_13 = arith.constant 0.000000e+00 : f32
    %21 = vector.broadcast %cst_13 : f32 to vector<2x8x16xf32>
    %c0_i32_14 = arith.constant 0 : i32
    %22 = vector.broadcast %c0_i32_14 : i32 to vector<2x8x8xi32>
    %23 = arith.cmpi eq, %1, %22 : vector<2x8x8xi32>
    %24 = arith.extui %23 : vector<2x8x8xi1> to vector<2x8x8xi32>
    %25 = arith.sitofp %24 : vector<2x8x8xi32> to vector<2x8x8xf32>
    %cst_15 = arith.constant dense<0.000000e+00> : vector<2x8xf32>
    %26 = vector.multi_reduction <add>, %25, %cst_15 [2] : vector<2x8x8xf32> to vector<2x8xf32>
    %27 = vector.shape_cast %26 : vector<2x8xf32> to vector<2x8x1xf32>
    %28 = vector.extract_strided_slice %2 {offsets = [0, 0], sizes = [1, 16], strides = [1, 1]} : vector<16x16xf32> to vector<1x16xf32>
    %29 = vector.shape_cast %28 : vector<1x16xf32> to vector<16xf32>
    %30 = vector.shape_cast %29 : vector<16xf32> to vector<1x1x16xf32>
    %31 = vector.broadcast %27 : vector<2x8x1xf32> to vector<2x8x16xf32>
    %32 = vector.broadcast %30 : vector<1x1x16xf32> to vector<2x8x16xf32>
    %33 = arith.mulf %31, %32 : vector<2x8x16xf32>
    %34 = arith.addf %21, %33 : vector<2x8x16xf32>
    %c1_i32 = arith.constant 1 : i32
    %35 = vector.broadcast %c1_i32 : i32 to vector<2x8x8xi32>
    %36 = arith.cmpi eq, %1, %35 : vector<2x8x8xi32>
    %37 = arith.extui %36 : vector<2x8x8xi1> to vector<2x8x8xi32>
    %38 = arith.sitofp %37 : vector<2x8x8xi32> to vector<2x8x8xf32>
    %cst_16 = arith.constant dense<0.000000e+00> : vector<2x8xf32>
    %39 = vector.multi_reduction <add>, %38, %cst_16 [2] : vector<2x8x8xf32> to vector<2x8xf32>
    %40 = vector.shape_cast %39 : vector<2x8xf32> to vector<2x8x1xf32>
    %41 = vector.extract_strided_slice %2 {offsets = [1, 0], sizes = [1, 16], strides = [1, 1]} : vector<16x16xf32> to vector<1x16xf32>
    %42 = vector.shape_cast %41 : vector<1x16xf32> to vector<16xf32>
    %43 = vector.shape_cast %42 : vector<16xf32> to vector<1x1x16xf32>
    %44 = vector.broadcast %40 : vector<2x8x1xf32> to vector<2x8x16xf32>
    %45 = vector.broadcast %43 : vector<1x1x16xf32> to vector<2x8x16xf32>
    %46 = arith.mulf %44, %45 : vector<2x8x16xf32>
    %47 = arith.addf %34, %46 : vector<2x8x16xf32>
    %c2_i32 = arith.constant 2 : i32
    %48 = vector.broadcast %c2_i32 : i32 to vector<2x8x8xi32>
    %49 = arith.cmpi eq, %1, %48 : vector<2x8x8xi32>
    %50 = arith.extui %49 : vector<2x8x8xi1> to vector<2x8x8xi32>
    %51 = arith.sitofp %50 : vector<2x8x8xi32> to vector<2x8x8xf32>
    %cst_17 = arith.constant dense<0.000000e+00> : vector<2x8xf32>
    %52 = vector.multi_reduction <add>, %51, %cst_17 [2] : vector<2x8x8xf32> to vector<2x8xf32>
    %53 = vector.shape_cast %52 : vector<2x8xf32> to vector<2x8x1xf32>
    %54 = vector.extract_strided_slice %2 {offsets = [2, 0], sizes = [1, 16], strides = [1, 1]} : vector<16x16xf32> to vector<1x16xf32>
    %55 = vector.shape_cast %54 : vector<1x16xf32> to vector<16xf32>
    %56 = vector.shape_cast %55 : vector<16xf32> to vector<1x1x16xf32>
    %57 = vector.broadcast %53 : vector<2x8x1xf32> to vector<2x8x16xf32>
    %58 = vector.broadcast %56 : vector<1x1x16xf32> to vector<2x8x16xf32>
    %59 = arith.mulf %57, %58 : vector<2x8x16xf32>
    %60 = arith.addf %47, %59 : vector<2x8x16xf32>
    %c3_i32 = arith.constant 3 : i32
    %61 = vector.broadcast %c3_i32 : i32 to vector<2x8x8xi32>
    %62 = arith.cmpi eq, %1, %61 : vector<2x8x8xi32>
    %63 = arith.extui %62 : vector<2x8x8xi1> to vector<2x8x8xi32>
    %64 = arith.sitofp %63 : vector<2x8x8xi32> to vector<2x8x8xf32>
    %cst_18 = arith.constant dense<0.000000e+00> : vector<2x8xf32>
    %65 = vector.multi_reduction <add>, %64, %cst_18 [2] : vector<2x8x8xf32> to vector<2x8xf32>
    %66 = vector.shape_cast %65 : vector<2x8xf32> to vector<2x8x1xf32>
    %67 = vector.extract_strided_slice %2 {offsets = [3, 0], sizes = [1, 16], strides = [1, 1]} : vector<16x16xf32> to vector<1x16xf32>
    %68 = vector.shape_cast %67 : vector<1x16xf32> to vector<16xf32>
    %69 = vector.shape_cast %68 : vector<16xf32> to vector<1x1x16xf32>
    %70 = vector.broadcast %66 : vector<2x8x1xf32> to vector<2x8x16xf32>
    %71 = vector.broadcast %69 : vector<1x1x16xf32> to vector<2x8x16xf32>
    %72 = arith.mulf %70, %71 : vector<2x8x16xf32>
    %73 = arith.addf %60, %72 : vector<2x8x16xf32>
    %c4_i32 = arith.constant 4 : i32
    %74 = vector.broadcast %c4_i32 : i32 to vector<2x8x8xi32>
    %75 = arith.cmpi eq, %1, %74 : vector<2x8x8xi32>
    %76 = arith.extui %75 : vector<2x8x8xi1> to vector<2x8x8xi32>
    %77 = arith.sitofp %76 : vector<2x8x8xi32> to vector<2x8x8xf32>
    %cst_19 = arith.constant dense<0.000000e+00> : vector<2x8xf32>
    %78 = vector.multi_reduction <add>, %77, %cst_19 [2] : vector<2x8x8xf32> to vector<2x8xf32>
    %79 = vector.shape_cast %78 : vector<2x8xf32> to vector<2x8x1xf32>
    %80 = vector.extract_strided_slice %2 {offsets = [4, 0], sizes = [1, 16], strides = [1, 1]} : vector<16x16xf32> to vector<1x16xf32>
    %81 = vector.shape_cast %80 : vector<1x16xf32> to vector<16xf32>
    %82 = vector.shape_cast %81 : vector<16xf32> to vector<1x1x16xf32>
    %83 = vector.broadcast %79 : vector<2x8x1xf32> to vector<2x8x16xf32>
    %84 = vector.broadcast %82 : vector<1x1x16xf32> to vector<2x8x16xf32>
    %85 = arith.mulf %83, %84 : vector<2x8x16xf32>
    %86 = arith.addf %73, %85 : vector<2x8x16xf32>
    %c5_i32 = arith.constant 5 : i32
    %87 = vector.broadcast %c5_i32 : i32 to vector<2x8x8xi32>
    %88 = arith.cmpi eq, %1, %87 : vector<2x8x8xi32>
    %89 = arith.extui %88 : vector<2x8x8xi1> to vector<2x8x8xi32>
    %90 = arith.sitofp %89 : vector<2x8x8xi32> to vector<2x8x8xf32>
    %cst_20 = arith.constant dense<0.000000e+00> : vector<2x8xf32>
    %91 = vector.multi_reduction <add>, %90, %cst_20 [2] : vector<2x8x8xf32> to vector<2x8xf32>
    %92 = vector.shape_cast %91 : vector<2x8xf32> to vector<2x8x1xf32>
    %93 = vector.extract_strided_slice %2 {offsets = [5, 0], sizes = [1, 16], strides = [1, 1]} : vector<16x16xf32> to vector<1x16xf32>
    %94 = vector.shape_cast %93 : vector<1x16xf32> to vector<16xf32>
    %95 = vector.shape_cast %94 : vector<16xf32> to vector<1x1x16xf32>
    %96 = vector.broadcast %92 : vector<2x8x1xf32> to vector<2x8x16xf32>
    %97 = vector.broadcast %95 : vector<1x1x16xf32> to vector<2x8x16xf32>
    %98 = arith.mulf %96, %97 : vector<2x8x16xf32>
    %99 = arith.addf %86, %98 : vector<2x8x16xf32>
    %c6_i32 = arith.constant 6 : i32
    %100 = vector.broadcast %c6_i32 : i32 to vector<2x8x8xi32>
    %101 = arith.cmpi eq, %1, %100 : vector<2x8x8xi32>
    %102 = arith.extui %101 : vector<2x8x8xi1> to vector<2x8x8xi32>
    %103 = arith.sitofp %102 : vector<2x8x8xi32> to vector<2x8x8xf32>
    %cst_21 = arith.constant dense<0.000000e+00> : vector<2x8xf32>
    %104 = vector.multi_reduction <add>, %103, %cst_21 [2] : vector<2x8x8xf32> to vector<2x8xf32>
    %105 = vector.shape_cast %104 : vector<2x8xf32> to vector<2x8x1xf32>
    %106 = vector.extract_strided_slice %2 {offsets = [6, 0], sizes = [1, 16], strides = [1, 1]} : vector<16x16xf32> to vector<1x16xf32>
    %107 = vector.shape_cast %106 : vector<1x16xf32> to vector<16xf32>
    %108 = vector.shape_cast %107 : vector<16xf32> to vector<1x1x16xf32>
    %109 = vector.broadcast %105 : vector<2x8x1xf32> to vector<2x8x16xf32>
    %110 = vector.broadcast %108 : vector<1x1x16xf32> to vector<2x8x16xf32>
    %111 = arith.mulf %109, %110 : vector<2x8x16xf32>
    %112 = arith.addf %99, %111 : vector<2x8x16xf32>
    %c7_i32 = arith.constant 7 : i32
    %113 = vector.broadcast %c7_i32 : i32 to vector<2x8x8xi32>
    %114 = arith.cmpi eq, %1, %113 : vector<2x8x8xi32>
    %115 = arith.extui %114 : vector<2x8x8xi1> to vector<2x8x8xi32>
    %116 = arith.sitofp %115 : vector<2x8x8xi32> to vector<2x8x8xf32>
    %cst_22 = arith.constant dense<0.000000e+00> : vector<2x8xf32>
    %117 = vector.multi_reduction <add>, %116, %cst_22 [2] : vector<2x8x8xf32> to vector<2x8xf32>
    %118 = vector.shape_cast %117 : vector<2x8xf32> to vector<2x8x1xf32>
    %119 = vector.extract_strided_slice %2 {offsets = [7, 0], sizes = [1, 16], strides = [1, 1]} : vector<16x16xf32> to vector<1x16xf32>
    %120 = vector.shape_cast %119 : vector<1x16xf32> to vector<16xf32>
    %121 = vector.shape_cast %120 : vector<16xf32> to vector<1x1x16xf32>
    %122 = vector.broadcast %118 : vector<2x8x1xf32> to vector<2x8x16xf32>
    %123 = vector.broadcast %121 : vector<1x1x16xf32> to vector<2x8x16xf32>
    %124 = arith.mulf %122, %123 : vector<2x8x16xf32>
    %125 = arith.addf %112, %124 : vector<2x8x16xf32>
    %c8_i32 = arith.constant 8 : i32
    %126 = vector.broadcast %c8_i32 : i32 to vector<2x8x8xi32>
    %127 = arith.cmpi eq, %1, %126 : vector<2x8x8xi32>
    %128 = arith.extui %127 : vector<2x8x8xi1> to vector<2x8x8xi32>
    %129 = arith.sitofp %128 : vector<2x8x8xi32> to vector<2x8x8xf32>
    %cst_23 = arith.constant dense<0.000000e+00> : vector<2x8xf32>
    %130 = vector.multi_reduction <add>, %129, %cst_23 [2] : vector<2x8x8xf32> to vector<2x8xf32>
    %131 = vector.shape_cast %130 : vector<2x8xf32> to vector<2x8x1xf32>
    %132 = vector.extract_strided_slice %2 {offsets = [8, 0], sizes = [1, 16], strides = [1, 1]} : vector<16x16xf32> to vector<1x16xf32>
    %133 = vector.shape_cast %132 : vector<1x16xf32> to vector<16xf32>
    %134 = vector.shape_cast %133 : vector<16xf32> to vector<1x1x16xf32>
    %135 = vector.broadcast %131 : vector<2x8x1xf32> to vector<2x8x16xf32>
    %136 = vector.broadcast %134 : vector<1x1x16xf32> to vector<2x8x16xf32>
    %137 = arith.mulf %135, %136 : vector<2x8x16xf32>
    %138 = arith.addf %125, %137 : vector<2x8x16xf32>
    %c9_i32 = arith.constant 9 : i32
    %139 = vector.broadcast %c9_i32 : i32 to vector<2x8x8xi32>
    %140 = arith.cmpi eq, %1, %139 : vector<2x8x8xi32>
    %141 = arith.extui %140 : vector<2x8x8xi1> to vector<2x8x8xi32>
    %142 = arith.sitofp %141 : vector<2x8x8xi32> to vector<2x8x8xf32>
    %cst_24 = arith.constant dense<0.000000e+00> : vector<2x8xf32>
    %143 = vector.multi_reduction <add>, %142, %cst_24 [2] : vector<2x8x8xf32> to vector<2x8xf32>
    %144 = vector.shape_cast %143 : vector<2x8xf32> to vector<2x8x1xf32>
    %145 = vector.extract_strided_slice %2 {offsets = [9, 0], sizes = [1, 16], strides = [1, 1]} : vector<16x16xf32> to vector<1x16xf32>
    %146 = vector.shape_cast %145 : vector<1x16xf32> to vector<16xf32>
    %147 = vector.shape_cast %146 : vector<16xf32> to vector<1x1x16xf32>
    %148 = vector.broadcast %144 : vector<2x8x1xf32> to vector<2x8x16xf32>
    %149 = vector.broadcast %147 : vector<1x1x16xf32> to vector<2x8x16xf32>
    %150 = arith.mulf %148, %149 : vector<2x8x16xf32>
    %151 = arith.addf %138, %150 : vector<2x8x16xf32>
    %c10_i32 = arith.constant 10 : i32
    %152 = vector.broadcast %c10_i32 : i32 to vector<2x8x8xi32>
    %153 = arith.cmpi eq, %1, %152 : vector<2x8x8xi32>
    %154 = arith.extui %153 : vector<2x8x8xi1> to vector<2x8x8xi32>
    %155 = arith.sitofp %154 : vector<2x8x8xi32> to vector<2x8x8xf32>
    %cst_25 = arith.constant dense<0.000000e+00> : vector<2x8xf32>
    %156 = vector.multi_reduction <add>, %155, %cst_25 [2] : vector<2x8x8xf32> to vector<2x8xf32>
    %157 = vector.shape_cast %156 : vector<2x8xf32> to vector<2x8x1xf32>
    %158 = vector.extract_strided_slice %2 {offsets = [10, 0], sizes = [1, 16], strides = [1, 1]} : vector<16x16xf32> to vector<1x16xf32>
    %159 = vector.shape_cast %158 : vector<1x16xf32> to vector<16xf32>
    %160 = vector.shape_cast %159 : vector<16xf32> to vector<1x1x16xf32>
    %161 = vector.broadcast %157 : vector<2x8x1xf32> to vector<2x8x16xf32>
    %162 = vector.broadcast %160 : vector<1x1x16xf32> to vector<2x8x16xf32>
    %163 = arith.mulf %161, %162 : vector<2x8x16xf32>
    %164 = arith.addf %151, %163 : vector<2x8x16xf32>
    %c11_i32 = arith.constant 11 : i32
    %165 = vector.broadcast %c11_i32 : i32 to vector<2x8x8xi32>
    %166 = arith.cmpi eq, %1, %165 : vector<2x8x8xi32>
    %167 = arith.extui %166 : vector<2x8x8xi1> to vector<2x8x8xi32>
    %168 = arith.sitofp %167 : vector<2x8x8xi32> to vector<2x8x8xf32>
    %cst_26 = arith.constant dense<0.000000e+00> : vector<2x8xf32>
    %169 = vector.multi_reduction <add>, %168, %cst_26 [2] : vector<2x8x8xf32> to vector<2x8xf32>
    %170 = vector.shape_cast %169 : vector<2x8xf32> to vector<2x8x1xf32>
    %171 = vector.extract_strided_slice %2 {offsets = [11, 0], sizes = [1, 16], strides = [1, 1]} : vector<16x16xf32> to vector<1x16xf32>
    %172 = vector.shape_cast %171 : vector<1x16xf32> to vector<16xf32>
    %173 = vector.shape_cast %172 : vector<16xf32> to vector<1x1x16xf32>
    %174 = vector.broadcast %170 : vector<2x8x1xf32> to vector<2x8x16xf32>
    %175 = vector.broadcast %173 : vector<1x1x16xf32> to vector<2x8x16xf32>
    %176 = arith.mulf %174, %175 : vector<2x8x16xf32>
    %177 = arith.addf %164, %176 : vector<2x8x16xf32>
    %c12_i32 = arith.constant 12 : i32
    %178 = vector.broadcast %c12_i32 : i32 to vector<2x8x8xi32>
    %179 = arith.cmpi eq, %1, %178 : vector<2x8x8xi32>
    %180 = arith.extui %179 : vector<2x8x8xi1> to vector<2x8x8xi32>
    %181 = arith.sitofp %180 : vector<2x8x8xi32> to vector<2x8x8xf32>
    %cst_27 = arith.constant dense<0.000000e+00> : vector<2x8xf32>
    %182 = vector.multi_reduction <add>, %181, %cst_27 [2] : vector<2x8x8xf32> to vector<2x8xf32>
    %183 = vector.shape_cast %182 : vector<2x8xf32> to vector<2x8x1xf32>
    %184 = vector.extract_strided_slice %2 {offsets = [12, 0], sizes = [1, 16], strides = [1, 1]} : vector<16x16xf32> to vector<1x16xf32>
    %185 = vector.shape_cast %184 : vector<1x16xf32> to vector<16xf32>
    %186 = vector.shape_cast %185 : vector<16xf32> to vector<1x1x16xf32>
    %187 = vector.broadcast %183 : vector<2x8x1xf32> to vector<2x8x16xf32>
    %188 = vector.broadcast %186 : vector<1x1x16xf32> to vector<2x8x16xf32>
    %189 = arith.mulf %187, %188 : vector<2x8x16xf32>
    %190 = arith.addf %177, %189 : vector<2x8x16xf32>
    %c13_i32 = arith.constant 13 : i32
    %191 = vector.broadcast %c13_i32 : i32 to vector<2x8x8xi32>
    %192 = arith.cmpi eq, %1, %191 : vector<2x8x8xi32>
    %193 = arith.extui %192 : vector<2x8x8xi1> to vector<2x8x8xi32>
    %194 = arith.sitofp %193 : vector<2x8x8xi32> to vector<2x8x8xf32>
    %cst_28 = arith.constant dense<0.000000e+00> : vector<2x8xf32>
    %195 = vector.multi_reduction <add>, %194, %cst_28 [2] : vector<2x8x8xf32> to vector<2x8xf32>
    %196 = vector.shape_cast %195 : vector<2x8xf32> to vector<2x8x1xf32>
    %197 = vector.extract_strided_slice %2 {offsets = [13, 0], sizes = [1, 16], strides = [1, 1]} : vector<16x16xf32> to vector<1x16xf32>
    %198 = vector.shape_cast %197 : vector<1x16xf32> to vector<16xf32>
    %199 = vector.shape_cast %198 : vector<16xf32> to vector<1x1x16xf32>
    %200 = vector.broadcast %196 : vector<2x8x1xf32> to vector<2x8x16xf32>
    %201 = vector.broadcast %199 : vector<1x1x16xf32> to vector<2x8x16xf32>
    %202 = arith.mulf %200, %201 : vector<2x8x16xf32>
    %203 = arith.addf %190, %202 : vector<2x8x16xf32>
    %c14_i32 = arith.constant 14 : i32
    %204 = vector.broadcast %c14_i32 : i32 to vector<2x8x8xi32>
    %205 = arith.cmpi eq, %1, %204 : vector<2x8x8xi32>
    %206 = arith.extui %205 : vector<2x8x8xi1> to vector<2x8x8xi32>
    %207 = arith.sitofp %206 : vector<2x8x8xi32> to vector<2x8x8xf32>
    %cst_29 = arith.constant dense<0.000000e+00> : vector<2x8xf32>
    %208 = vector.multi_reduction <add>, %207, %cst_29 [2] : vector<2x8x8xf32> to vector<2x8xf32>
    %209 = vector.shape_cast %208 : vector<2x8xf32> to vector<2x8x1xf32>
    %210 = vector.extract_strided_slice %2 {offsets = [14, 0], sizes = [1, 16], strides = [1, 1]} : vector<16x16xf32> to vector<1x16xf32>
    %211 = vector.shape_cast %210 : vector<1x16xf32> to vector<16xf32>
    %212 = vector.shape_cast %211 : vector<16xf32> to vector<1x1x16xf32>
    %213 = vector.broadcast %209 : vector<2x8x1xf32> to vector<2x8x16xf32>
    %214 = vector.broadcast %212 : vector<1x1x16xf32> to vector<2x8x16xf32>
    %215 = arith.mulf %213, %214 : vector<2x8x16xf32>
    %216 = arith.addf %203, %215 : vector<2x8x16xf32>
    %c15_i32 = arith.constant 15 : i32
    %217 = vector.broadcast %c15_i32 : i32 to vector<2x8x8xi32>
    %218 = arith.cmpi eq, %1, %217 : vector<2x8x8xi32>
    %219 = arith.extui %218 : vector<2x8x8xi1> to vector<2x8x8xi32>
    %220 = arith.sitofp %219 : vector<2x8x8xi32> to vector<2x8x8xf32>
    %cst_30 = arith.constant dense<0.000000e+00> : vector<2x8xf32>
    %221 = vector.multi_reduction <add>, %220, %cst_30 [2] : vector<2x8x8xf32> to vector<2x8xf32>
    %222 = vector.shape_cast %221 : vector<2x8xf32> to vector<2x8x1xf32>
    %223 = vector.extract_strided_slice %2 {offsets = [15, 0], sizes = [1, 16], strides = [1, 1]} : vector<16x16xf32> to vector<1x16xf32>
    %224 = vector.shape_cast %223 : vector<1x16xf32> to vector<16xf32>
    %225 = vector.shape_cast %224 : vector<16xf32> to vector<1x1x16xf32>
    %226 = vector.broadcast %222 : vector<2x8x1xf32> to vector<2x8x16xf32>
    %227 = vector.broadcast %225 : vector<1x1x16xf32> to vector<2x8x16xf32>
    %228 = arith.mulf %226, %227 : vector<2x8x16xf32>
    %229 = arith.addf %216, %228 : vector<2x8x16xf32>
    "tpu.trace_start"() <{level = 10 : i32, message = "bij,bjd->bid"}> : () -> ()
    %cst_31 = arith.constant dense<0.000000e+00> : vector<2x8x16xf32>
    %230 = tpu.matmul %6, %10, %cst_31 {dimension_numbers = #tpu.dot_dimension_numbers<[2], [1], [1], [2], [0, 0, 0, 1, 1, 2], [0], [0]>} : vector<2x8x8xf32>, vector<2x8x16xf32>, vector<2x8x16xf32> -> vector<2x8x16xf32>
    "tpu.trace_stop"() : () -> ()
    %231 = arith.addf %9, %230 : vector<2x8x16xf32>
    %232 = arith.addf %231, %229 : vector<2x8x16xf32>
    "tpu.trace_start"() <{level = 10 : i32, message = "bik,bjk->bij"}> : () -> ()
    %cst_32 = arith.constant dense<0.000000e+00> : vector<2x8x8xf32>
    %233 = tpu.matmul %15, %20, %cst_32 {dimension_numbers = #tpu.dot_dimension_numbers<[2], [2], [1], [1], [0, 0, 0, 1, 1, 1], [0], [0]>} : vector<2x8x16xf32>, vector<2x8x16xf32>, vector<2x8x8xf32> -> vector<2x8x8xf32>
    "tpu.trace_stop"() : () -> ()
    %cst_33 = arith.constant 0.000000e+00 : f32
    %234 = vector.broadcast %cst_33 : f32 to vector<2x8x8xf32>
    %235 = arith.maximumf %233, %234 : vector<2x8x8xf32>
    "tpu.trace_start"() <{level = 10 : i32, message = "bij,bjk->bik"}> : () -> ()
    %cst_34 = arith.constant dense<0.000000e+00> : vector<2x8x8xf32>
    %236 = tpu.matmul %6, %235, %cst_34 {dimension_numbers = #tpu.dot_dimension_numbers<[2], [1], [1], [2], [0, 0, 0, 1, 1, 2], [0], [0]>} : vector<2x8x8xf32>, vector<2x8x8xf32>, vector<2x8x8xf32> -> vector<2x8x8xf32>
    "tpu.trace_stop"() : () -> ()
    %cst_35 = arith.constant dense<0xFF800000> : vector<2x8xf32>
    %237 = vector.multi_reduction <maximumf>, %236, %cst_35 [1] : vector<2x8x8xf32> to vector<2x8xf32>
    %238 = vector.shape_cast %237 : vector<2x8xf32> to vector<2x1x8xf32>
    %239 = vector.broadcast %238 : vector<2x1x8xf32> to vector<2x8x8xf32>
    %240 = arith.subf %236, %239 : vector<2x8x8xf32>
    %241 = math.exp %240 : vector<2x8x8xf32>
    %cst_36 = arith.constant dense<0.000000e+00> : vector<2x8xf32>
    %242 = vector.multi_reduction <add>, %241, %cst_36 [1] : vector<2x8x8xf32> to vector<2x8xf32>
    %243 = vector.shape_cast %242 : vector<2x8xf32> to vector<2x1x8xf32>
    %244 = tpu.reciprocal %243 {approx = true} : vector<2x1x8xf32> -> vector<2x1x8xf32>
    %245 = vector.broadcast %244 : vector<2x1x8xf32> to vector<2x8x8xf32>
    %246 = arith.mulf %241, %245 : vector<2x8x8xf32>
    "tpu.trace_start"() <{level = 10 : i32, message = "bij,bjd->bid"}> : () -> ()
    %cst_37 = arith.constant dense<0.000000e+00> : vector<2x8x16xf32>
    %247 = tpu.matmul %246, %232, %cst_37 {dimension_numbers = #tpu.dot_dimension_numbers<[2], [1], [1], [2], [0, 0, 0, 1, 1, 2], [0], [0]>} : vector<2x8x8xf32>, vector<2x8x16xf32>, vector<2x8x16xf32> -> vector<2x8x16xf32>
    "tpu.trace_stop"() : () -> ()
    %c0_38 = arith.constant 0 : index
    %c0_39 = arith.constant 0 : index
    %c0_40 = arith.constant 0 : index
    %248 = vector.load %arg7[%c0_38, %c0_39, %c0_40] : memref<2x8x16xf32, #tpu.memory_space<vmem>>, vector<2x8x16xf32>
    tpu.vector_store %arg7[%c0_38, %c0_39, %c0_40], %247 {strides = array<i32>} : memref<2x8x16xf32, #tpu.memory_space<vmem>>, vector<2x8x16xf32>,
    %c0_41 = arith.constant 0 : index
    %c0_42 = arith.constant 0 : index
    %c0_43 = arith.constant 0 : index
    %249 = vector.load %arg8[%c0_41, %c0_42, %c0_43] : memref<2x8x8xf32, #tpu.memory_space<vmem>>, vector<2x8x8xf32>
    tpu.vector_store %arg8[%c0_41, %c0_42, %c0_43], %246 {strides = array<i32>} : memref<2x8x8xf32, #tpu.memory_space<vmem>>, vector<2x8x8xf32>,
    return
  }
  func.func @transform_0(%arg0: i32) -> (i32, i32, i32) {
    %c0_i32 = arith.constant 0 : i32
    %c0_i32_0 = arith.constant 0 : i32
    %c0_i32_1 = arith.constant 0 : i32
    return %arg0, %c0_i32, %c0_i32_0 : i32, i32, i32
  }
  func.func @transform_1(%arg0: i32) -> (i32, i32, i32) {
    %c0_i32 = arith.constant 0 : i32
    %c0_i32_0 = arith.constant 0 : i32
    %c0_i32_1 = arith.constant 0 : i32
    return %arg0, %c0_i32, %c0_i32_0 : i32, i32, i32
  }
  func.func @transform_2(%arg0: i32) -> (i32, i32) {
    %c0_i32 = arith.constant 0 : i32
    %c0_i32_0 = arith.constant 0 : i32
    %c0_i32_1 = arith.constant 0 : i32
    return %c0_i32, %c0_i32_0 : i32, i32
  }
  func.func @transform_3(%arg0: i32) -> (i32, i32) {
    %c0_i32 = arith.constant 0 : i32
    %c0_i32_0 = arith.constant 0 : i32
    %c0_i32_1 = arith.constant 0 : i32
    return %c0_i32, %c0_i32_0 : i32, i32
  }
  func.func @transform_4(%arg0: i32) -> (i32, i32) {
    %c0_i32 = arith.constant 0 : i32
    %c0_i32_0 = arith.constant 0 : i32
    %c0_i32_1 = arith.constant 0 : i32
    return %c0_i32, %c0_i32_0 : i32, i32
  }
  func.func @transform_5(%arg0: i32) -> (i32, i32) {
    %c0_i32 = arith.constant 0 : i32
    %c0_i32_0 = arith.constant 0 : i32
    %c0_i32_1 = arith.constant 0 : i32
    return %c0_i32, %c0_i32_0 : i32, i32
  }
  func.func @transform_6(%arg0: i32) -> (i32, i32, i32) {
    %c0_i32 = arith.constant 0 : i32
    %c0_i32_0 = arith.constant 0 : i32
    %c0_i32_1 = arith.constant 0 : i32
    return %arg0, %c0_i32, %c0_i32_0 : i32, i32, i32
  }
  func.func @transform_7(%arg0: i32) -> (i32, i32, i32) {
    %c0_i32 = arith.constant 0 : i32
    %c0_i32_0 = arith.constant 0 : i32
    %c0_i32_1 = arith.constant 0 : i32
    return %arg0, %c0_i32, %c0_i32_0 : i32, i32, i32
  }
}

</mosaic_0001>

<bundles_post_ra>
// kernel: tpu_custom_call.1
= control target key start
LH: loop header
LB: loop body
LE: loop exit
PB: predicated region body
PF: predicated region fallthrough
CT: control target
= control target key end

     0   :  { %13 = vsyncpa [#allocation3], 0  ;;  %s1831_s0 = inlined_call_operand.hbm [shape: f32[2,8,16], index: 0, kind: input, shape index: {}]   ;;  %s1832_s1 = inlined_call_operand.hbm [shape: s32[2,8,8], index: 1, kind: input, shape index: {}]   ;;  %s1833_s2 = inlined_call_operand.hbm [shape: f32[16,64], index: 2, kind: input, shape index: {}]   ;;  %s1834_s3 = inlined_call_operand.hbm [shape: f32[16,16], index: 3, kind: input, shape index: {}]   ;;  %s1835_s4 = inlined_call_operand.vmem [shape: f32[1,16], index: 4, kind: input, shape index: {}]   ;;  %s1836_s5 = inlined_call_operand.vmem [shape: f32[1,16], index: 5, kind: input, shape index: {}]   ;;  %s1837_s6 = inlined_call_operand.hbm [shape: f32[2,8,16], index: 6, kind: output, shape index: {0}]   ;;  %s1838_s7 = inlined_call_operand.hbm [shape: f32[2,8,8], index: 7, kind: output, shape index: {1}]  }
   0x1   :  { %14 = vsyncpa [#allocation6], 0 }
   0x2   :  { %15 = vsyncpa [#allocation9], 0 }
   0x3   :  { %16 = vsyncpa [#allocation4], 0 }
   0x4   :  { %17 = vsyncpa [#allocation12], 0  ;;  %s1488_s24 = smov [#allocation5]   ;;  %s1489_s26 = smov [#allocation2]  }
   0x5   :  { %s35_s25 = sshll.u32 %s1488_s24, 4  ;;  %s23_s27 = sshll.u32 %s1489_s26, 4  ;;  %s36_s25 = int_to_ptr.vmem [resolvable:$true] %s35_s25  ;;  %s1543_s27 = int_to_ptr.vmem [resolvable:$true] %s23_s27 }
   0x6   :  { %s1346_s30 = scalar_lea.hbm %s1832_s1, 256 }
   0x7   :  { %p1347_p0 = scmp.ne.s32.totalorder %s1832_s1, %s1346_s30  ;;  %p1350_p1 = scmp.lt.u32.totalorder %s1346_s30, %s1832_s1 }
   0x9   :  { %p1352_p2 = pnand %p1350_p1, %p1347_p0 }
   0xb   :  { %1355 = shalt.err (!%p1352_p2)
}
   0xc   :  { %s1356_s12 = scalar_lea.vmem %s36_s25, 256  ;;  %p1361_p4 = scmp.lt.s32.totalorder %s36_s25, %s36_s25 }
   0xd   :  { %p1357_p3 = scmp.ne.s32.totalorder %s36_s25, %s1356_s12  ;;  %p1362_p5 = scmp.lt.s32.totalorder %s1356_s12, %s1356_s12 }
   0xf   :  { %p1363_p6 = por %p1362_p5, %p1361_p4 }
  0x11   :  { %p1364_p7 = pnand %p1363_p6, %p1357_p3 }
  0x13   :  { %1367 = shalt.err (!%p1364_p7)
}
  0x14   :  { %s1490_s13 = smov 128   ;;  %s1491_s14 = smov 8  }
  0x15   :  { %41 = dma.hbm_to_vmem [thread:$0]  %s1832_s1, 256, %s36_s25, [#allocation6], %s1490_s13, %s1490_s13, %s1491_s14  }
  0x16   :  { %s1368_s19 = scalar_lea.hbm %s1831_s0, 256 }
  0x17   :  { %p1369_p8 = scmp.ne.s32.totalorder %s1831_s0, %s1368_s19  ;;  %p1372_p9 = scmp.lt.u32.totalorder %s1368_s19, %s1831_s0 }
  0x19   :  { %p1374_p10 = pnand %p1372_p9, %p1369_p8 }
  0x1b   :  { %1377 = shalt.err (!%p1374_p10)
}
  0x1c   :  { %s1378_s24 = scalar_lea.vmem %s1543_s27, 256  ;;  %p1383_p12 = scmp.lt.s32.totalorder %s1543_s27, %s1543_s27 }
  0x1d   :  { %p1379_p11 = scmp.ne.s32.totalorder %s1543_s27, %s1378_s24  ;;  %p1384_p13 = scmp.lt.s32.totalorder %s1378_s24, %s1378_s24 }
  0x1f   :  { %p1385_p0 = por %p1384_p13, %p1383_p12 }
  0x21   :  { %p1386_p1 = pnand %p1385_p0, %p1379_p11 }
  0x23   :  { %1389 = shalt.err (!%p1386_p1)
}
  0x24   :  { %29 = dma.hbm_to_vmem [thread:$0]  %s1831_s0, 256, %s1543_s27, [#allocation3], %s1490_s13, %s1490_s13, %s1491_s14  }
  0x25   :  { %s1492_s26 = smov [#allocation7]   ;;  %s1493_s29 = smov [#allocation8]  }
  0x26   :  { %s47_s28 = sshll.u32 %s1492_s26, 4  ;;  %s59_s30 = sshll.u32 %s1493_s29, 4  ;;  %s48_s28 = int_to_ptr.vmem [resolvable:$true] %s47_s28  ;;  %s1580_s30 = int_to_ptr.vmem [resolvable:$true] %s59_s30 }
  0x27   :  { %s1390_s10 = scalar_lea.hbm %s1833_s2, 256 }
  0x28   :  { %p1391_p2 = scmp.ne.s32.totalorder %s1833_s2, %s1390_s10  ;;  %p1394_p3 = scmp.lt.u32.totalorder %s1390_s10, %s1833_s2 }
  0x2a   :  { %p1396_p4 = pnand %p1394_p3, %p1391_p2 }
  0x2c   :  { %1399 = shalt.err (!%p1396_p4)
}
  0x2d   :  { %s1400_s0 = scalar_lea.vmem %s48_s28, 256  ;;  %p1405_p6 = scmp.lt.s32.totalorder %s48_s28, %s48_s28 }
  0x2e   :  { %p1401_p5 = scmp.ne.s32.totalorder %s48_s28, %s1400_s0  ;;  %p1406_p7 = scmp.lt.s32.totalorder %s1400_s0, %s1400_s0 }
  0x30   :  { %p1407_p8 = por %p1406_p7, %p1405_p6 }
  0x32   :  { %p1408_p9 = pnand %p1407_p8, %p1401_p5 }
  0x34   :  { %1411 = shalt.err (!%p1408_p9)
}
  0x35   :  { %53 = dma.hbm_to_vmem [thread:$0]  %s1833_s2, 256, %s48_s28, [#allocation6], %s1490_s13, %s1490_s13, %s1491_s14  }
  0x36   :  { %s1412_s20 = scalar_lea.hbm %s1834_s3, 256 }
  0x37   :  { %p1413_p10 = scmp.ne.s32.totalorder %s1834_s3, %s1412_s20  ;;  %p1416_p11 = scmp.lt.u32.totalorder %s1412_s20, %s1834_s3 }
  0x39   :  { %p1418_p12 = pnand %p1416_p11, %p1413_p10 }
  0x3b   :  { %1421 = shalt.err (!%p1418_p12)
}
  0x3c   :  { %s1422_s1 = scalar_lea.vmem %s1580_s30, 256  ;;  %p1427_p0 = scmp.lt.s32.totalorder %s1580_s30, %s1580_s30 }
  0x3d   :  { %p1423_p13 = scmp.ne.s32.totalorder %s1580_s30, %s1422_s1  ;;  %p1428_p1 = scmp.lt.s32.totalorder %s1422_s1, %s1422_s1 }
  0x3f   :  { %p1429_p2 = por %p1428_p1, %p1427_p0 }
  0x41   :  { %p1430_p3 = pnand %p1429_p2, %p1423_p13 }
  0x43   :  { %1433 = shalt.err (!%p1430_p3)
}
  0x44   :  { %65 = dma.hbm_to_vmem [thread:$0]  %s1834_s3, 256, %s1580_s30, [#allocation9], %s1490_s13, %s1490_s13, %s1491_s14  }
  0x45   :  { %1478 = dma.done.wait [#allocation3], 256  }
  0x46   :  { %1479 = vsyncadd [#allocation3], 4294967040 }
  0x47   :  { %1480 = dma.done.wait [#allocation6], 512  }
  0x48   :  { %1481 = vsyncadd [#allocation6], 4294966784 }
  0x49   :  { %1482 = dma.done.wait [#allocation9], 256  }
  0x4a   :  { %1483 = vsyncadd [#allocation9], 4294967040  ;;  %vm96_vm0 = vcmask 130048   ;;  %v94_v0 = vld [vmem:[#allocation7] sm:$0xff]  ;;  %v95_v1 = vld [vmem:[#allocation7 + $0x8] sm:$0xff]  ;;  %s1494_s29 = smov 48  }
  0x4b   :  { %v82_v2 = vld [vmem:[#allocation2] sm:$0xff]  ;;  %v1319_v3 = vpack.c.bf16 %v95_v1, %v94_v0  ;;  %v83_v6 = vld [vmem:[#allocation2 + $0x8] sm:$0xff]  ;;  %s1495_s8 = smov 32   ;;  %v1496_v7 = vmov 0.0   ;;  %vm1497_vm1 = vmmov 0   ;;  %s1500_s9 = smov 96  }
  0x4c   :  { %1276 = vmatprep.mubr.msk.f32.mxu0 %vm96_vm0, %v82_v2  ;;  %v1209_v4 = vld [vmem:[%s1836_s5] ss:$0 sm:$0xff]  ;;  %1279 = vmatprep.subr.mxu1 %v1496_v7  ;;  %s1499_s5 = smov 80   ;;  %v1641_v16 = vld [vmem:[#allocation5] sm:$0xff]  ;;  %vm206_vm4 = vcmask 64512   ;;  %v1647_v19 = vld [vmem:[#allocation5 + $0x8] sm:$0xff] }
  0x4d   :  { %195 = vrot.lane.b32.xlu0 %v1209_v4, %s1494_s29  ;;  %1320 = vmatprep.subr.bf16.mxu0 %v1319_v3  ;;  %v1208_v5 = vld [vmem:[%s1835_s4] ss:$0 sm:$0xff]  ;;  %s1498_s4 = smov 112   ;;  %vm200_vm2 = vcmp.eq.s32.totalorder %v1641_v16, 0  ;;  %vm221_vm3 = vcmp.eq.s32.totalorder %v1641_v16, 1  ;;  %vm222_vm5 = vcmp.eq.s32.totalorder %v1647_v19, 1 }
  0x4e   :  { %1322 = vmatpush3.bf16.msra.mxu0 %v1319_v3  ;;  %1281 = vmatprep.mubr.msk.f32.mxu1 %vm1497_vm1, %v1496_v7  ;;  %v1210_v17 = vsel %vm200_vm2, 1.0, %v1496_v7  ;;  %v1212_v20 = vsel %vm221_vm3, 1.0, %v1496_v7  ;;  %vm201_vm6 = vcmp.eq.s32.totalorder %v1647_v19, 0  ;;  %v1213_v22 = vsel %vm222_vm5, 1.0, %v1496_v7  ;;  %s1501_s10 = smov [#allocation11]  }
  0x4f   :  { %1289 = vmatprep.subr.mxu0 %v1496_v7  ;;  %v207_v18 = vsel %vm206_vm4, %v1210_v17, 0.0  ;;  %v227_v21 = vsel %vm206_vm4, %v1212_v20, 0.0  ;;  %vm242_vm7 = vcmp.eq.s32.totalorder %v1647_v19, 2  ;;  %v1211_v23 = vsel %vm201_vm6, 1.0, %v1496_v7  ;;  %s1186_s11 = sshll.u32 %s1501_s10, 4  ;;  %s1187_s11 = int_to_ptr.vmem [resolvable:$true] %s1186_s11 }
  0x50   :  { %v230_v24 = vsel %vm206_vm4, %v1213_v22, 0.0  ;;  %vm241_vm8 = vcmp.eq.s32.totalorder %v1641_v16, 2  ;;  %v1215_v25 = vsel %vm242_vm7, 1.0, %v1496_v7  ;;  %vm262_vm9 = vcmp.eq.s32.totalorder %v1647_v19, 3  ;;  %s1434_s12 = scalar_lea.vmem %s1187_s11, 256  ;;  %p1439_p5 = scmp.lt.s32.totalorder %s1187_s11, %s1187_s11 }
  0x51   :  { %184 = vrot.lane.b32.xlu0 %v1208_v5, %s1495_s8  ;;  %1277 = vmatmul.mubr.msk.f32.vlgmr.msra.gmra.mrb[0].mxu0 %vm96_vm0, %v83_v6  ;;  %v210_v26 = vsel %vm206_vm4, %v1211_v23, 0.0  ;;  %v1214_v27 = vsel %vm241_vm8, 1.0, %v1496_v7  ;;  %v250_v28 = vsel %vm206_vm4, %v1215_v25, 0.0  ;;  %vm261_vm10 = vcmp.eq.s32.totalorder %v1641_v16, 3  ;;  %p1435_p4 = scmp.ne.s32.totalorder %s1187_s11, %s1434_s12  ;;  %p1440_p6 = scmp.lt.s32.totalorder %s1434_s12, %s1434_s12 }
  0x52   :  { %1291 = vmatprep.mubr.msk.f32.mxu0 %vm1497_vm1, %v1496_v7  ;;  %v1217_v29 = vsel %vm262_vm9, 1.0, %v1496_v7  ;;  %vm282_vm11 = vcmp.eq.s32.totalorder %v1647_v19, 4  ;;  %v247_v30 = vsel %vm206_vm4, %v1214_v27, 0.0  ;;  %v1216_v31 = vsel %vm261_vm10, 1.0, %v1496_v7 }
  0x53   :  { %v270_v32 = vsel %vm206_vm4, %v1217_v29, 0.0  ;;  %vm281_vm12 = vcmp.eq.s32.totalorder %v1641_v16, 4  ;;  %v1219_v33 = vsel %vm282_vm11, 1.0, %v1496_v7  ;;  %vm302_vm13 = vcmp.eq.s32.totalorder %v1647_v19, 5  ;;  %p1441_p7 = por %p1440_p6, %p1439_p5 }
  0x54   :  { %v267_v34 = vsel %vm206_vm4, %v1216_v31, 0.0  ;;  %v1218_v35 = vsel %vm281_vm12, 1.0, %v1496_v7  ;;  %v290_v36 = vsel %vm206_vm4, %v1219_v33, 0.0  ;;  %vm301_vm14 = vcmp.eq.s32.totalorder %v1641_v16, 5 }
  0x55   :  { %v1221_v37 = vsel %vm302_vm13, 1.0, %v1496_v7  ;;  %vm322_vm15 = vcmp.eq.s32.totalorder %v1647_v19, 6  ;;  %v287_v38 = vsel %vm206_vm4, %v1218_v35, 0.0  ;;  %v1220_v39 = vsel %vm301_vm14, 1.0, %v1496_v7  ;;  %p1442_p8 = pnand %p1441_p7, %p1435_p4 }
  0x56   :  { %v310_v40 = vsel %vm206_vm4, %v1221_v37, 0.0  ;;  %vm321_vm2 = vcmp.eq.s32.totalorder %v1641_v16, 6  ;;  %v1223_v41 = vsel %vm322_vm15, 1.0, %v1496_v7  ;;  %vm342_vm3 = vcmp.eq.s32.totalorder %v1647_v19, 7 }
  0x57   :  { %v307_v42 = vsel %vm206_vm4, %v1220_v39, 0.0  ;;  %v1222_v43 = vsel %vm321_vm2, 1.0, %v1496_v7  ;;  %v330_v44 = vsel %vm206_vm4, %v1223_v41, 0.0  ;;  %vm341_vm5 = vcmp.eq.s32.totalorder %v1641_v16, 7 }
  0x58   :  { %v1225_v45 = vsel %vm342_vm3, 1.0, %v1496_v7  ;;  %vm362_vm6 = vcmp.eq.s32.totalorder %v1647_v19, 8  ;;  %v327_v46 = vsel %vm206_vm4, %v1222_v43, 0.0  ;;  %v1224_v47 = vsel %vm341_vm5, 1.0, %v1496_v7 }
  0x59   :  { %v350_v48 = vsel %vm206_vm4, %v1225_v45, 0.0  ;;  %vm361_vm7 = vcmp.eq.s32.totalorder %v1641_v16, 8  ;;  %v1227_v49 = vsel %vm362_vm6, 1.0, %v1496_v7  ;;  %vm382_vm8 = vcmp.eq.s32.totalorder %v1647_v19, 9 }
  0x5a   :  { %v347_v50 = vsel %vm206_vm4, %v1224_v47, 0.0  ;;  %v1226_v51 = vsel %vm361_vm7, 1.0, %v1496_v7  ;;  %v370_v52 = vsel %vm206_vm4, %v1227_v49, 0.0  ;;  %vm381_vm9 = vcmp.eq.s32.totalorder %v1641_v16, 9 }
  0x5b   :  { %v1229_v53 = vsel %vm382_vm8, 1.0, %v1496_v7  ;;  %vm402_vm10 = vcmp.eq.s32.totalorder %v1647_v19, 10  ;;  %v367_v54 = vsel %vm206_vm4, %v1226_v51, 0.0  ;;  %v1228_v55 = vsel %vm381_vm9, 1.0, %v1496_v7 }
  0x5c   :  { %v390_v56 = vsel %vm206_vm4, %v1229_v53, 0.0  ;;  %vm401_vm11 = vcmp.eq.s32.totalorder %v1641_v16, 10  ;;  %v1231_v57 = vsel %vm402_vm10, 1.0, %v1496_v7  ;;  %vm422_vm12 = vcmp.eq.s32.totalorder %v1647_v19, 11 }
  0x5d   :  { %v387_v58 = vsel %vm206_vm4, %v1228_v55, 0.0  ;;  %v1230_v59 = vsel %vm401_vm11, 1.0, %v1496_v7  ;;  %v410_v60 = vsel %vm206_vm4, %v1231_v57, 0.0  ;;  %vm421_vm13 = vcmp.eq.s32.totalorder %v1641_v16, 11 }
  0x5e   :  { %v1233_v61 = vsel %vm422_vm12, 1.0, %v1496_v7  ;;  %vm442_vm14 = vcmp.eq.s32.totalorder %v1647_v19, 12  ;;  %v407_v62 = vsel %vm206_vm4, %v1230_v59, 0.0  ;;  %v1232_v63 = vsel %vm421_vm13, 1.0, %v1496_v7 }
  0x5f   :  { %v430_v0 = vsel %vm206_vm4, %v1233_v61, 0.0  ;;  %vm441_vm15 = vcmp.eq.s32.totalorder %v1641_v16, 12  ;;  %v1235_v1 = vsel %vm442_vm14, 1.0, %v1496_v7  ;;  %vm462_vm2 = vcmp.eq.s32.totalorder %v1647_v19, 13 }
  0x60   :  { %v427_v2 = vsel %vm206_vm4, %v1232_v63, 0.0  ;;  %v1234_v3 = vsel %vm441_vm15, 1.0, %v1496_v7  ;;  %v450_v4 = vsel %vm206_vm4, %v1235_v1, 0.0  ;;  %vm461_vm3 = vcmp.eq.s32.totalorder %v1641_v16, 13 }
  0x61   :  { %v1237_v5 = vsel %vm462_vm2, 1.0, %v1496_v7  ;;  %vm482_vm5 = vcmp.eq.s32.totalorder %v1647_v19, 14  ;;  %v447_v6 = vsel %vm206_vm4, %v1234_v3, 0.0  ;;  %vm481_vm6 = vcmp.eq.s32.totalorder %v1641_v16, 14 }
  0x62   :  { %vm502_vm7 = vcmp.eq.s32.totalorder %v1647_v19, 15  ;;  %vm501_vm8 = vcmp.eq.s32.totalorder %v1641_v16, 15  ;;  %vm88_vm9 = vcmp.ne.s32.totalorder %v1641_v16, 0  ;;  %vm89_vm10 = vcmp.ne.s32.totalorder %v1647_v19, 0 }
  0x63   :  { %v1241_v17 = vsel %vm502_vm7, 1.0, %v1496_v7  ;;  %v1240_v20 = vsel %vm501_vm8, 1.0, %v1496_v7  ;;  %v1743_v23 = vsel %vm88_vm9, 1.0, %v1496_v7  ;;  %v1753_v16 = vsel %vm89_vm10, 1.0, %v1496_v7 }
  0x64   :  { %v507_v22 = vsel %vm206_vm4, %v1240_v20, 0.0 }
  0xbf   :  { %v196_v8 = vpop.permute.xlu0 %195 }
  0xc3   :  { %v185_v12 = vpop.permute.xlu0 %184 }
 0x124   :  { %v1631_v9 = vpop.f32.mrb[0].mxu0 }
 0x125   :  { %v1633_v10 = vpop.f32.mrb[1].mxu0  ;;  %v199_v14 = vadd.f32 %v1631_v9, %v196_v8  ;;  %v188_v15 = vadd.f32 %v1631_v9, %v185_v12 }
 0x126   :  { %522 = vrot.lane.b32.xlu1 %v1633_v10, %s1498_s4  ;;  %v198_v11 = vadd.f32 %v196_v8, %v1633_v10  ;;  %v187_v13 = vadd.f32 %v185_v12, %v1633_v10  ;;  %v1236_v8 = vsel %vm461_vm3, 1.0, %v1496_v7  ;;  %v1239_v12 = vsel %vm482_vm5, 1.0, %v1496_v7 }
 0x128   :  { %683 = vrot.lane.b32.xlu0 %v198_v11, %s1499_s5  ;;  %v470_v11 = vsel %vm206_vm4, %v1237_v5, 0.0 }
 0x12a   :  { %599 = vrot.lane.b32.xlu1 %v1631_v9, %s1498_s4 }
 0x12c   :  { %680 = vrot.lane.b32.xlu0 %v187_v13, %s1500_s9  ;;  %v467_v13 = vsel %vm206_vm4, %v1236_v8, 0.0 }
 0x12e   :  { %763 = vrot.lane.b32.xlu1 %v199_v14, %s1499_s5  ;;  %v1238_v14 = vsel %vm481_vm6, 1.0, %v1496_v7 }
 0x132   :  { %760 = vrot.lane.b32.xlu1 %v188_v15, %s1500_s9  ;;  %v490_v15 = vsel %vm206_vm4, %v1239_v12, 0.0 }
 0x14b   :  { %208 = vadd.xlane.f32.xlu0 %v207_v18  ;;  %v487_v18 = vsel %vm206_vm4, %v1238_v14, 0.0 }
 0x14f   :  { %228 = vadd.xlane.f32.xlu0 %v227_v21  ;;  %v510_v21 = vsel %vm206_vm4, %v1241_v17, 0.0 }
 0x153   :  { %231 = vadd.xlane.f32.xlu0 %v230_v24 }
 0x156   :  { %211 = vadd.xlane.f32.xlu1 %v210_v26 }
 0x157   :  { %251 = vadd.xlane.f32.xlu0 %v250_v28 }
 0x15a   :  { %248 = vadd.xlane.f32.xlu1 %v247_v30 }
 0x15b   :  { %271 = vadd.xlane.f32.xlu0 %v270_v32 }
 0x15e   :  { %268 = vadd.xlane.f32.xlu1 %v267_v34 }
 0x15f   :  { %291 = vadd.xlane.f32.xlu0 %v290_v36  ;;  %v213_v36 = vlaneseq }
 0x162   :  { %288 = vadd.xlane.f32.xlu1 %v287_v38  ;;  %v1769_v38 = vshrl.u32 %v213_v36, 7 }
 0x163   :  { %311 = vadd.xlane.f32.xlu0 %v310_v40 }
 0x164   :  { %v215_v40 = vsub.s32 0, %v1769_v38  ;;  %v235_v41 = vsub.s32 1, %v1769_v38  ;;  %v255_v47 = vsub.s32 2, %v1769_v38  ;;  %v315_v61 = vsub.s32 5, %v1769_v38 }
 0x165   :  { %v335_v3 = vsub.s32 6, %v1769_v38  ;;  %v355_v14 = vsub.s32 7, %v1769_v38 }
 0x166   :  { %308 = vadd.xlane.f32.xlu1 %v307_v42  ;;  %v86_v42 = vld [vmem:[#allocation8] sm:$0xff] }
 0x167   :  { %331 = vadd.xlane.f32.xlu0 %v330_v44  ;;  %v216_v45 = vrot.slane %v86_v42, %v215_v40  ;;  %v256_v51 = vrot.slane %v86_v42, %v255_v47 }
 0x16a   :  { %328 = vadd.xlane.f32.xlu1 %v327_v46  ;;  %v236_v46 = vrot.slane %v86_v42, %v235_v41 }
 0x16b   :  { %351 = vadd.xlane.f32.xlu0 %v350_v48 }
 0x16e   :  { %348 = vadd.xlane.f32.xlu1 %v347_v50 }
 0x16f   :  { %371 = vadd.xlane.f32.xlu0 %v370_v52  ;;  %v275_v52 = vsub.s32 3, %v1769_v38 }
 0x171   :  { %v276_v57 = vrot.slane %v86_v42, %v275_v52 }
 0x172   :  { %368 = vadd.xlane.f32.xlu1 %v367_v54  ;;  %v295_v54 = vsub.s32 4, %v1769_v38 }
 0x173   :  { %391 = vadd.xlane.f32.xlu0 %v390_v56 }
 0x176   :  { %388 = vadd.xlane.f32.xlu1 %v387_v58 }
 0x177   :  { %411 = vadd.xlane.f32.xlu0 %v410_v60  ;;  %v296_v60 = vrot.slane %v86_v42, %v295_v54 }
 0x17a   :  { %408 = vadd.xlane.f32.xlu1 %v407_v62 }
 0x17b   :  { %431 = vadd.xlane.f32.xlu0 %v430_v0 }
 0x17e   :  { %428 = vadd.xlane.f32.xlu1 %v427_v2  ;;  %v316_v2 = vrot.slane %v86_v42, %v315_v61 }
 0x17f   :  { %451 = vadd.xlane.f32.xlu0 %v450_v4 }
 0x182   :  { %448 = vadd.xlane.f32.xlu1 %v447_v6 }
 0x183   :  { %471 = vadd.xlane.f32.xlu0 %v470_v11 }
 0x186   :  { %468 = vadd.xlane.f32.xlu1 %v467_v13  ;;  %v336_v13 = vrot.slane %v86_v42, %v335_v3 }
 0x187   :  { %491 = vadd.xlane.f32.xlu0 %v490_v15 }
 0x18a   :  { %488 = vadd.xlane.f32.xlu1 %v487_v18 }
 0x18b   :  { %511 = vadd.xlane.f32.xlu0 %v510_v21 }
 0x18e   :  { %508 = vadd.xlane.f32.xlu1 %v507_v22 }
 0x198   :  { %v523_v24 = vpop.permute.xlu1 %522 }
 0x199   :  { %1280 = vmatpush3.msra.mxu1 %v523_v24  ;;  %v356_v24 = vrot.slane %v86_v42, %v355_v14 }
 0x19a   :  { %1282 = vmatmul.mubr.msk.f32.vlgmr.msra.gmra.mrb[0].mxu1 %vm206_vm4, %v1743_v23  ;;  %v684_v25 = vpop.permute.xlu0 %683  ;;  %1284 = vmatprep.subr.mxu1 %v1496_v7 }
 0x19b   :  { %1290 = vmatpush3.xpose.msk.msra.mxu0 %vm96_vm0, %v684_v25  ;;  %1286 = vmatprep.mubr.msk.f32.mxu1 %vm1497_vm1, %v1496_v7 }
 0x19c   :  { %v600_v26 = vpop.permute.xlu1 %599  ;;  %1299 = vmatprep.subr.mxu0 %v1496_v7 }
 0x19d   :  { %1285 = vmatpush3.msra.mxu1 %v600_v26 }
 0x19e   :  { %1287 = vmatmul.mubr.msk.f32.vlgmr.msra.gmra.mrb[2].mxu1 %vm206_vm4, %v1753_v16  ;;  %v681_v19 = vpop.permute.xlu0 %680  ;;  %1294 = vmatprep.subr.mxu1 %v1496_v7 }
 0x19f   :  { %1292 = vmatmul.mubr.msk.f32.vlgmr.msra.gmra.mrb[2].mxu0 %vm96_vm0, %v681_v19  ;;  %1296 = vmatprep.mubr.msk.f32.mxu1 %vm1497_vm1, %v1496_v7 }
 0x1a0   :  { %v764_v27 = vpop.permute.xlu1 %763  ;;  %1301 = vmatprep.mubr.msk.f32.mxu0 %vm1497_vm1, %v1496_v7 }
 0x1a4   :  { %1295 = vmatpush3.xpose.msk.msra.mxu1 %vm96_vm0, %v764_v27  ;;  %v761_v28 = vpop.permute.xlu1 %760 }
 0x1a5   :  { %1304 = vmatprep.subr.mxu1 %v1496_v7 }
 0x1a7   :  { %1297 = vmatmul.mubr.msk.f32.vlgmr.msra.gmra.mrb[4].mxu1 %vm96_vm0, %v761_v28  ;;  %v87_v28 = vld [vmem:[#allocation8 + $0x8] sm:$0xff] }
 0x1a8   :  { %1306 = vmatprep.mubr.msk.f32.mxu1 %vm1497_vm1, %v1496_v7  ;;  %v396_v36 = vrot.slane %v87_v28, %v235_v41  ;;  %v416_v42 = vrot.slane %v87_v28, %v255_v47 }
 0x1d8   :  { %v209_v29 = vpop.xlane.xlu0 %208 }
 0x1d9   :  { %v217_v49 = vmul.f32 %v216_v45, %v209_v29  ;;  %v376_v29 = vrot.slane %v87_v28, %v215_v40 }
 0x1dc   :  { %v229_v31 = vpop.xlane.xlu0 %228 }
 0x1dd   :  { %v237_v50 = vmul.f32 %v236_v46, %v229_v31 }
 0x1df   :  { %v239_v55 = vadd.f32 %v237_v50, %v217_v49 }
 0x1e0   :  { %v232_v33 = vpop.xlane.xlu0 %231 }
 0x1e1   :  { %v238_v0 = vmul.f32 %v236_v46, %v232_v33 }
 0x1e3   :  { %v212_v30 = vpop.xlane.xlu1 %211 }
 0x1e4   :  { %v252_v35 = vpop.xlane.xlu0 %251  ;;  %v218_v62 = vmul.f32 %v216_v45, %v212_v30 }
 0x1e5   :  { %v258_v8 = vmul.f32 %v256_v51, %v252_v35 }
 0x1e6   :  { %v240_v5 = vadd.f32 %v238_v0, %v218_v62 }
 0x1e7   :  { %v249_v32 = vpop.xlane.xlu1 %248 }
 0x1e8   :  { %v272_v39 = vpop.xlane.xlu0 %271  ;;  %v257_v56 = vmul.f32 %v256_v51, %v249_v32  ;;  %v260_v15 = vadd.f32 %v258_v8, %v240_v5  ;;  %v436_v51 = vrot.slane %v87_v28, %v275_v52  ;;  %v496_v8 = vrot.slane %v87_v28, %v335_v3 }
 0x1e9   :  { %v278_v18 = vmul.f32 %v276_v57, %v272_v39 }
 0x1ea   :  { %v259_v63 = vadd.f32 %v257_v56, %v239_v55 }
 0x1eb   :  { %v269_v34 = vpop.xlane.xlu1 %268  ;;  %v280_v25 = vadd.f32 %v278_v18, %v260_v15  ;;  %v516_v18 = vrot.slane %v87_v28, %v355_v14 }
 0x1ec   :  { %v292_v44 = vpop.xlane.xlu0 %291  ;;  %v277_v1 = vmul.f32 %v276_v57, %v269_v34 }
 0x1ed   :  { %v298_v19 = vmul.f32 %v296_v60, %v292_v44 }
 0x1ee   :  { %v279_v6 = vadd.f32 %v277_v1, %v259_v63 }
 0x1ef   :  { %v289_v37 = vpop.xlane.xlu1 %288  ;;  %v300_v31 = vadd.f32 %v298_v19, %v280_v25 }
 0x1f0   :  { %v312_v53 = vpop.xlane.xlu0 %311  ;;  %v297_v11 = vmul.f32 %v296_v60, %v289_v37  ;;  %v456_v60 = vrot.slane %v87_v28, %v295_v54 }
 0x1f1   :  { %v318_v33 = vmul.f32 %v316_v2, %v312_v53 }
 0x1f2   :  { %v299_v17 = vadd.f32 %v297_v11, %v279_v6 }
 0x1f3   :  { %v309_v43 = vpop.xlane.xlu1 %308  ;;  %v320_v37 = vadd.f32 %v318_v33, %v300_v31 }
 0x1f4   :  { %v332_v59 = vpop.xlane.xlu0 %331  ;;  %v317_v20 = vmul.f32 %v316_v2, %v309_v43  ;;  %v476_v2 = vrot.slane %v87_v28, %v315_v61 }
 0x1f5   :  { %v338_v39 = vmul.f32 %v336_v13, %v332_v59 }
 0x1f6   :  { %v319_v26 = vadd.f32 %v317_v20, %v299_v17 }
 0x1f7   :  { %v329_v48 = vpop.xlane.xlu1 %328  ;;  %v340_v49 = vadd.f32 %v338_v39, %v320_v37 }
 0x1f8   :  { %v352_v12 = vpop.xlane.xlu0 %351  ;;  %v337_v27 = vmul.f32 %v336_v13, %v329_v48 }
 0x1f9   :  { %v358_v44 = vmul.f32 %v356_v24, %v352_v12 }
 0x1fa   :  { %v339_v32 = vadd.f32 %v337_v27, %v319_v26 }
 0x1fb   :  { %v349_v58 = vpop.xlane.xlu1 %348  ;;  %v360_v55 = vadd.f32 %v358_v44, %v340_v49 }
 0x1fc   :  { %v372_v22 = vpop.xlane.xlu0 %371  ;;  %v357_v34 = vmul.f32 %v356_v24, %v349_v58 }
 0x1fd   :  { %v378_v57 = vmul.f32 %v376_v29, %v372_v22 }
 0x1fe   :  { %v359_v38 = vadd.f32 %v357_v34, %v339_v32 }
 0x1ff   :  { %v369_v4 = vpop.xlane.xlu1 %368  ;;  %v380_v41 = vadd.f32 %v378_v57, %v360_v55 }
 0x200   :  { %v392_v35 = vpop.xlane.xlu0 %391  ;;  %v377_v43 = vmul.f32 %v376_v29, %v369_v4 }
 0x201   :  { %v398_v63 = vmul.f32 %v396_v36, %v392_v35 }
 0x202   :  { %v379_v50 = vadd.f32 %v377_v43, %v359_v38 }
 0x203   :  { %v389_v21 = vpop.xlane.xlu1 %388  ;;  %v400_v47 = vadd.f32 %v398_v63, %v380_v41 }
 0x204   :  { %v412_v46 = vpop.xlane.xlu0 %411  ;;  %v397_v48 = vmul.f32 %v396_v36, %v389_v21 }
 0x205   :  { %v418_v5 = vmul.f32 %v416_v42, %v412_v46 }
 0x206   :  { %v399_v56 = vadd.f32 %v397_v48, %v379_v50 }
 0x207   :  { %v409_v30 = vpop.xlane.xlu1 %408  ;;  %v420_v11 = vadd.f32 %v418_v5, %v400_v47 }
 0x208   :  { %v417_v53 = vmul.f32 %v416_v42, %v409_v30  ;;  %v432_v58 = vpop.xlane.xlu0 %431 }
 0x209   :  { %v438_v13 = vmul.f32 %v436_v51, %v432_v58 }
 0x20a   :  { %v419_v62 = vadd.f32 %v417_v53, %v399_v56 }
 0x20b   :  { %v429_v45 = vpop.xlane.xlu1 %428  ;;  %v440_v54 = vadd.f32 %v438_v13, %v420_v11 }
 0x20c   :  { %v437_v59 = vmul.f32 %v436_v51, %v429_v45  ;;  %v452_v1 = vpop.xlane.xlu0 %451 }
 0x20d   :  { %v458_v21 = vmul.f32 %v456_v60, %v452_v1 }
 0x20e   :  { %v439_v4 = vadd.f32 %v437_v59, %v419_v62 }
 0x20f   :  { %v449_v40 = vpop.xlane.xlu1 %448  ;;  %v460_v26 = vadd.f32 %v458_v21, %v440_v54 }
 0x210   :  { %v457_v6 = vmul.f32 %v456_v60, %v449_v40  ;;  %v472_v17 = vpop.xlane.xlu0 %471 }
 0x211   :  { %v478_v19 = vmul.f32 %v476_v2, %v472_v17 }
 0x212   :  { %v459_v12 = vadd.f32 %v457_v6, %v439_v4 }
 0x213   :  { %v469_v0 = vpop.xlane.xlu1 %468  ;;  %v480_v31 = vadd.f32 %v478_v19, %v460_v26 }
 0x214   :  { %v477_v15 = vmul.f32 %v476_v2, %v469_v0  ;;  %v492_v25 = vpop.xlane.xlu0 %491 }
 0x215   :  { %v498_v33 = vmul.f32 %v496_v8, %v492_v25 }
 0x216   :  { %v479_v20 = vadd.f32 %v477_v15, %v459_v12 }
 0x217   :  { %v489_v52 = vpop.xlane.xlu1 %488  ;;  %v500_v39 = vadd.f32 %v498_v33, %v480_v31 }
 0x218   :  { %v497_v22 = vmul.f32 %v496_v8, %v489_v52  ;;  %v512_v34 = vpop.xlane.xlu0 %511 }
 0x219   :  { %v518_v45 = vmul.f32 %v516_v18, %v512_v34 }
 0x21a   :  { %v499_v61 = vadd.f32 %v497_v22, %v479_v20 }
 0x21b   :  { %v509_v24 = vpop.xlane.xlu1 %508 }
 0x21c   :  { %v517_v27 = vmul.f32 %v516_v18, %v509_v24 }
 0x21e   :  { %v519_v32 = vadd.f32 %v517_v27, %v499_v61 }
 0x26d   :  { %v594_v29 = vpop.f32.mrb[0].mxu1 }
 0x26e   :  { %v675_v3 = vadd.f32 %v594_v29, %v1633_v10  ;;  %v1283_v30 = vpop.f32.mrb[1].mxu1  ;;  %v520_v10 = vadd.f32 %v518_v45, %v500_v39 }
 0x270   :  { %v677_v43 = vadd.f32 %v675_v3, %v519_v32 }
 0x271   :  { %v671_v35 = vpop.f32.mrb[2].mxu1 }
 0x272   :  { %v676_v14 = vadd.f32 %v1631_v9, %v671_v35  ;;  %v755_v28 = vpop.f32.mrb[2].mxu0  ;;  %v1288_v36 = vpop.f32.mrb[3].mxu1 }
 0x273   :  { %v839_v37 = vmax.f32 %v755_v28, 0.0  ;;  %v1293_v38 = vpop.f32.mrb[3].mxu0 }
 0x274   :  { %v678_v49 = vadd.f32 %v676_v14, %v520_v10 }
 0x275   :  { %1300 = vmatpush3.msra.mxu0 %v839_v37 }
 0x276   :  { %1302 = vmatmul.mubr.msk.f32.vlgmr.msra.gmra.mrb[4].mxu0 %vm206_vm4, %v1743_v23  ;;  %1309 = vmatprep.subr.mxu0 %v1496_v7 }
 0x277   :  { %1310 = vmatpush3.msra.mxu0 %v677_v43  ;;  %1311 = vmatprep.mubr.msk.f32.mxu0 %vm1497_vm1, %v1496_v7 }
 0x27a   :  { %v835_v46 = vpop.f32.mrb[4].mxu1 }
 0x27b   :  { %v840_v9 = vmax.f32 %v835_v46, 0.0  ;;  %v1298_v42 = vpop.f32.mrb[5].mxu1 }
 0x27d   :  { %1305 = vmatpush3.msra.mxu1 %v840_v9 }
 0x27e   :  { %1307 = vmatmul.mubr.msk.f32.vlgmr.msra.gmra.mrb[6].mxu1 %vm206_vm4, %v1753_v16  ;;  %1314 = vmatprep.subr.mxu1 %v1496_v7 }
 0x27f   :  { %1315 = vmatpush3.msra.mxu1 %v678_v49  ;;  %1316 = vmatprep.mubr.msk.f32.mxu1 %vm1497_vm1, %v1496_v7 }
 0x349   :  { %v907_v23 = vpop.f32.mrb[4].mxu0 }
 0x34a   :  { %v981_v50 = vsel %vm206_vm4, %v907_v23, -inf  ;;  %v1303_v44 = vpop.f32.mrb[5].mxu0 }
 0x34b   :  { %v982_v48 = vrot.slane %v981_v50, 4 }
 0x34d   :  { %v983_v51 = vmax.f32 %v981_v50, %v982_v48 }
 0x34f   :  { %v984_v40 = vrot.slane %v983_v51, 2 }
 0x351   :  { %v985_v55 = vmax.f32 %v983_v51, %v984_v40  ;;  %v977_v56 = vpop.f32.mrb[6].mxu1 }
 0x352   :  { %v988_v57 = vsel %vm206_vm4, %v977_v56, -inf  ;;  %v1308_v53 = vpop.f32.mrb[7].mxu1 }
 0x353   :  { %v986_v58 = vrot.slane %v985_v55, 1  ;;  %v989_v16 = vrot.slane %v988_v57, 4 }
 0x355   :  { %v987_v60 = vmax.f32 %v985_v55, %v986_v58  ;;  %v990_v41 = vmax.f32 %v988_v57, %v989_v16 }
 0x357   :  { %v995_v62 = vsub.f32 %v907_v23, %v987_v60  ;;  %v991_v63 = vrot.slane %v990_v41, 2 }
 0x359   :  { %v997_v59 = vmul.f32 1.442695, %v995_v62  ;;  %v992_v7 = vmax.f32 %v990_v41, %v991_v63 }
 0x35b   :  { %1338 = vpow2.f32 %v997_v59  ;;  %v993_v0 = vrot.slane %v992_v7, 1 }
 0x35d   :  { %v994_v1 = vmax.f32 %v992_v7, %v993_v0 }
 0x35f   :  { %v996_v2 = vsub.f32 %v977_v56, %v994_v1 }
 0x361   :  { %v999_v47 = vmul.f32 1.442695, %v996_v2 }
 0x363   :  { %1340 = vpow2.f32 %v999_v47 }
 0x365   :  { %v1339_v4 = vpop.eup %1338 }
 0x366   :  { %v1001_v5 = vsel %vm206_vm4, %v1339_v4, 0.0 }
 0x367   :  { %v1002_v6 = vrot.slane %v1001_v5, 4 }
 0x369   :  { %v1003_v8 = vadd.f32 %v1002_v6, %v1001_v5 }
 0x36b   :  { %v1004_v52 = vrot.slane %v1003_v8, 2 }
 0x36d   :  { %v1341_v11 = vpop.eup %1340  ;;  %v1005_v12 = vadd.f32 %v1004_v52, %v1003_v8 }
 0x36e   :  { %v1008_v13 = vsel %vm206_vm4, %v1341_v11, 0.0 }
 0x36f   :  { %v1006_v15 = vrot.slane %v1005_v12, 1  ;;  %v1009_v17 = vrot.slane %v1008_v13, 4 }
 0x371   :  { %v1007_v18 = vadd.f32 %v1006_v15, %v1005_v12  ;;  %v1010_v54 = vadd.f32 %v1009_v17, %v1008_v13 }
 0x373   :  { %1342 = vrcp.f32 %v1007_v18  ;;  %v1011_v20 = vrot.slane %v1010_v54, 2 }
 0x375   :  { %v1012_v21 = vadd.f32 %v1011_v20, %v1010_v54 }
 0x377   :  { %v1013_v22 = vrot.slane %v1012_v21, 1 }
 0x379   :  { %v1014_v24 = vadd.f32 %v1013_v22, %v1012_v21 }
 0x37b   :  { %1344 = vrcp.f32 %v1014_v24 }
 0x37d   :  { %v1343_v25 = vpop.eup %1342 }
 0x37e   :  { %v1017_v26 = vmul.f32 %v1343_v25, %v1339_v4 }
 0x380   :  { %1312 = vmatmul.mubr.msk.f32.vlgmr.msra.gmra.mrb[6].mxu0 %vm206_vm4, %v1017_v26  ;;  %1167 = vst.msk [vmem:[#allocation11] sm:$0xff] %vm206_vm4, %v1017_v26 }
 0x385   :  { %v1345_v61 = vpop.eup %1344 }
 0x386   :  { %v1018_v19 = vmul.f32 %v1345_v61, %v1341_v11 }
 0x388   :  { %1317 = vmatmul.mubr.msk.f32.vlgmr.msra.gmra.mrb[8].mxu1 %vm206_vm4, %v1018_v19  ;;  %1168 = vst.msk [vmem:[#allocation11 + $0x8] sm:$0xff] %vm206_vm4, %v1018_v19 }
 0x389   :  { %1445 = shalt.err (!%p1442_p8)
}
 0x38a   :  { %s1446_s0 = scalar_lea.hbm %s1838_s7, 256 }
 0x38b   :  { %p1447_p9 = scmp.ne.s32.totalorder %s1838_s7, %s1446_s0  ;;  %p1450_p10 = scmp.lt.u32.totalorder %s1446_s0, %s1838_s7 }
 0x38d   :  { %p1452_p11 = pnand %p1450_p10, %p1447_p9 }
 0x38f   :  { %1455 = shalt.err (!%p1452_p11)
}
 0x390   :  { %1192 = dma.vmem_to_hbm [thread:$0]  %s1187_s11, 256, %s1838_s7, [#allocation12], %s1490_s13, %s1490_s13, %s1491_s14  }
 0x391   :  { %s1502_s22 = smov [#allocation10]  }
 0x392   :  { %s1174_s23 = sshll.u32 %s1502_s22, 4  ;;  %s1175_s23 = int_to_ptr.vmem [resolvable:$true] %s1174_s23 }
 0x393   :  { %s1456_s24 = scalar_lea.vmem %s1175_s23, 256  ;;  %p1461_p13 = scmp.lt.s32.totalorder %s1175_s23, %s1175_s23 }
 0x394   :  { %p1457_p12 = scmp.ne.s32.totalorder %s1175_s23, %s1456_s24  ;;  %p1462_p0 = scmp.lt.s32.totalorder %s1456_s24, %s1456_s24 }
 0x396   :  { %p1463_p1 = por %p1462_p0, %p1461_p13 }
 0x398   :  { %p1464_p2 = pnand %p1463_p1, %p1457_p12 }
 0x453   :  { %v1088_v27 = vpop.f32.mrb[6].mxu0 }
 0x454   :  { %1165 = vst.msk [vmem:[#allocation10] sm:$0xff] %vm96_vm0, %v1088_v27  ;;  %v1313_v29 = vpop.f32.mrb[7].mxu0 }
 0x45b   :  { %v1161_v3 = vpop.f32.mrb[8].mxu1 }
 0x45c   :  { %1166 = vst.msk [vmem:[#allocation10 + $0x8] sm:$0xff] %vm96_vm0, %v1161_v3  ;;  %v1318_v30 = vpop.f32.mrb[9].mxu1 }
 0x45d   :  { %1467 = shalt.err (!%p1464_p2)
}
 0x45e   :  { %s1468_s2 = scalar_lea.hbm %s1837_s6, 256 }
 0x45f   :  { %p1469_p3 = scmp.ne.s32.totalorder %s1837_s6, %s1468_s2  ;;  %p1472_p4 = scmp.lt.u32.totalorder %s1468_s2, %s1837_s6 }
 0x461   :  { %p1474_p5 = pnand %p1472_p4, %p1469_p3 }
 0x463   :  { %1477 = shalt.err (!%p1474_p5)
}
 0x464   :  { %1180 = dma.vmem_to_hbm [thread:$0]  %s1175_s23, 256, %s1837_s6, [#allocation4], %s1490_s13, %s1490_s13, %s1491_s14  }
 0x465   :  { %1484 = dma.done.wait [#allocation4], 256  }
 0x466   :  { %1485 = vsyncadd [#allocation4], 4294967040 }
 0x467   :  { %1486 = dma.done.wait [#allocation12], 256  }
 0x468   :  { %1487 = vsyncadd [#allocation12], 4294967040 }
 0x469   :  { %1199 = vsyncpa [#allocation3], 1 }
 0x46a   :  { %1200 = vsyncpa [#allocation6], 1 }
 0x46b   :  { %1201 = vsyncpa [#allocation9], 1 }
 0x46c   :  { %1202 = vsyncpa [#allocation4], 1 }
 0x46d   :  { %1203 = vsyncpa [#allocation12], 1 }

</bundles_post_ra>
